<compile_context>
chip_gen: v7x
topology: tpu7x:2x2x1
jax: 0.10.0
libtpu: 0.0.40
codegen_flags: <defaults>
</compile_context>

<pallas_src>
import functools

import jax
import jax.numpy as jnp
from jax.experimental import pallas as pl
from jax.experimental.pallas import tpu as pltpu

IN_FEATURES = 3
OUT_FEATURES = 5
OUT_PAD_SUB = 8     # pad 5 output features to 8 sublanes (f32 sublane group)
LANE = 128          # lane width; batch lives on lanes


def _round_up(n, m):
    return ((n + m - 1) // m) * m


def _linear_sum_kernel(w_ref, b_ref, xy_ref, o_ref):
    # w_ref : SMEM (5, 3) f32     b_ref : SMEM (5,) f32
    # xy_ref: VMEM (2, 3, tb)     o_ref : VMEM (8, tb)
    tb = o_ref.shape[-1]
    # Fused elementwise add; feature axis (3) on sublanes, batch on lanes.
    z = (xy_ref[0] + xy_ref[1]).astype(jnp.float32)          # (3, tb)

    rows = []
    for j in range(OUT_FEATURES):                            # 5 output rows
        acc = b_ref[j] + w_ref[j, 0] * z[0:1, :]             # scalar splat FMA
        for k in range(1, IN_FEATURES):
            acc = acc + w_ref[j, k] * z[k:k + 1, :]
        rows.append(acc)                                     # (1, tb) each
    # Dead sublanes 5..7 (sliced off in the wrapper) -> keep the store full
    # width / unmasked.
    rows.append(jnp.zeros((OUT_PAD_SUB - OUT_FEATURES, tb), jnp.float32))
    o_ref[...] = jnp.concatenate(rows, axis=0).astype(o_ref.dtype)


@functools.partial(jax.jit, static_argnames=("tile_b",))
def multiple_input_forward(x, y, w, b, *, tile_b=16384):
    """Pallas forward of MultipleInput: Linear(x + y).

    x, y : (B, 3)
    w    : (5, 3)   (PyTorch nn.Linear weight layout)
    b    : (5,)
    returns (B, 5)
    """
    B, in_f = x.shape
    out_f = w.shape[0]
    assert in_f == IN_FEATURES and out_f == OUT_FEATURES

    dtype = x.dtype

    # --- wrapper-side layout plumbing (batch -> lanes) ---------------------
    B_pad = _round_up(B, LANE)
    xy = jnp.stack([x, y], axis=0)                 # (2, B, 3)
    xy = jnp.transpose(xy, (0, 2, 1))              # (2, 3, B)
    if B_pad != B:
        xy = jnp.pad(xy, ((0, 0), (0, 0), (0, B_pad - B)))

    # Tile over lanes: multiple of 128, at least 2 tiles when B_pad > 128
    # (so v7x's second TensorCore gets work), capped by tile_b.
    tb = min(tile_b, B_pad)
    if B_pad > LANE:
        tb = min(tb, _round_up(pl.cdiv(B_pad, 2), LANE))
    tb = max(tb, LANE)
    grid = (pl.cdiv(B_pad, tb),)

    # Parameters stay f32 scalars in SMEM (no lane padding, no VMEM tiles).
    w_s = w.astype(jnp.float32)                    # (5, 3)
    b_s = b.astype(jnp.float32)                    # (5,)

    cost = pl.CostEstimate(
        flops=B_pad * (IN_FEATURES + 2 * IN_FEATURES * OUT_FEATURES),
        transcendentals=0,
        bytes_accessed=4 * (2 * B_pad * IN_FEATURES      # inputs
                            + OUT_PAD_SUB * B_pad        # output
                            + OUT_FEATURES * (IN_FEATURES + 1)),
    )

    out_padded = pl.pallas_call(
        _linear_sum_kernel,
        out_shape=jax.ShapeDtypeStruct((OUT_PAD_SUB, B_pad), dtype),
        grid=grid,
        in_specs=[
            pl.BlockSpec(memory_space=pltpu.MemorySpace.SMEM),   # w (5,3)
            pl.BlockSpec(memory_space=pltpu.MemorySpace.SMEM),   # b (5,)
            pl.BlockSpec((2, IN_FEATURES, tb), lambda i: (0, 0, i)),
        ],
        out_specs=pl.BlockSpec((OUT_PAD_SUB, tb), lambda i: (0, i)),
        compiler_params=pltpu.CompilerParams(
            dimension_semantics=("parallel",),
        ),
        cost_estimate=cost,
    )(w_s, b_s, xy)

    # Strip sublane + lane padding and return row-major (B, 5).
    return jnp.transpose(out_padded[:out_f, :B]).astype(dtype)


if __name__ == "__main__":
    key = jax.random.PRNGKey(0)
    kx, ky, kw, kb = jax.random.split(key, 4)

    B = 8
    x = jax.random.normal(kx, (B, IN_FEATURES), dtype=jnp.float32)
    y = jax.random.normal(ky, (B, IN_FEATURES), dtype=jnp.float32)

    # Deterministic parameter init (mimics nn.Linear uniform(-1/sqrt(in), 1/sqrt(in))).
    bound = 1.0 / (IN_FEATURES ** 0.5)
    w = jax.random.uniform(kw, (OUT_FEATURES, IN_FEATURES),
                           minval=-bound, maxval=bound, dtype=jnp.float32)
    b = jax.random.uniform(kb, (OUT_FEATURES,),
                           minval=-bound, maxval=bound, dtype=jnp.float32)

    out = multiple_input_forward(x, y, w, b)
    jax.block_until_ready(out)

    ref = (x + y) @ w.T + b
    assert out.shape == (B, OUT_FEATURES)
    assert jnp.allclose(out, ref, atol=1e-5), "mismatch vs. JAX reference"

    # Exercise the lane-padding path (B not a multiple of 128).
    B2 = 13
    x2 = jax.random.normal(kx, (B2, IN_FEATURES), dtype=jnp.float32)
    y2 = jax.random.normal(ky, (B2, IN_FEATURES), dtype=jnp.float32)
    out2 = multiple_input_forward(x2, y2, w, b)
    jax.block_until_ready(out2)
    ref2 = (x2 + y2) @ w.T + b
    assert out2.shape == (B2, OUT_FEATURES)
    assert jnp.allclose(out2, ref2, atol=1e-5), "mismatch vs. JAX reference (padded batch)"

    # Exercise the multi-tile (>=2 grid steps) path.
    B3 = 300
    x3 = jax.random.normal(kx, (B3, IN_FEATURES), dtype=jnp.float32)
    y3 = jax.random.normal(ky, (B3, IN_FEATURES), dtype=jnp.float32)
    out3 = multiple_input_forward(x3, y3, w, b)
    jax.block_until_ready(out3)
    ref3 = (x3 + y3) @ w.T + b
    assert out3.shape == (B3, OUT_FEATURES)
    assert jnp.allclose(out3, ref3, atol=1e-5), "mismatch vs. JAX reference (multi-tile)"

    print("KERNEL_OK")
</pallas_src>

<mosaic_0001>
module attributes {stable_mosaic.version = 11 : i64} {
  func.func @_linear_sum_kernel(%arg0: i32, %arg1: memref<5x3xf32, #tpu.memory_space<smem>>, %arg2: memref<5xf32, #tpu.memory_space<smem>>, %arg3: memref<2x3x128xf32, #tpu.memory_space<vmem>>, %arg4: memref<8x128xf32, #tpu.memory_space<vmem>>) attributes {dimension_semantics = [#tpu.dimension_semantics<parallel>], iteration_bounds = array<i64: 1>, scalar_prefetch = 0 : i64, scratch_operands = 0 : i64, tpu.core_type = #tpu.core_type<tc>, window_params = [{transform_indices = @transform_0, window_bounds = array<i64: 5, 3>}, {transform_indices = @transform_1, window_bounds = array<i64: 5>}, {transform_indices = @transform_2, window_bounds = array<i64: 2, 3, 128>}, {transform_indices = @transform_3, window_bounds = array<i64: 8, 128>}]} {
    %c0 = arith.constant 0 : index
    %c0_0 = arith.constant 0 : index
    %c0_1 = arith.constant 0 : index
    %0 = vector.load %arg3[%c0, %c0_0, %c0_1] : memref<2x3x128xf32, #tpu.memory_space<vmem>>, vector<1x3x128xf32>
    %1 = vector.shape_cast %0 : vector<1x3x128xf32> to vector<3x128xf32>
    %c1 = arith.constant 1 : index
    %c0_2 = arith.constant 0 : index
    %c0_3 = arith.constant 0 : index
    %2 = vector.load %arg3[%c1, %c0_2, %c0_3] : memref<2x3x128xf32, #tpu.memory_space<vmem>>, vector<1x3x128xf32>
    %3 = vector.shape_cast %2 : vector<1x3x128xf32> to vector<3x128xf32>
    %4 = arith.addf %1, %3 : vector<3x128xf32>
    %c0_4 = arith.constant 0 : index
    %5 = memref.load %arg2[%c0_4] : memref<5xf32, #tpu.memory_space<smem>>
    %c0_5 = arith.constant 0 : index
    %c0_6 = arith.constant 0 : index
    %6 = memref.load %arg1[%c0_5, %c0_6] : memref<5x3xf32, #tpu.memory_space<smem>>
    %7 = vector.extract_strided_slice %4 {offsets = [0, 0], sizes = [1, 128], strides = [1, 1]} : vector<3x128xf32> to vector<1x128xf32>
    %8 = vector.broadcast %6 : f32 to vector<1x128xf32>
    %9 = arith.mulf %8, %7 : vector<1x128xf32>
    %10 = vector.broadcast %5 : f32 to vector<1x128xf32>
    %11 = arith.addf %10, %9 : vector<1x128xf32>
    %c0_7 = arith.constant 0 : index
    %c1_8 = arith.constant 1 : index
    %12 = memref.load %arg1[%c0_7, %c1_8] : memref<5x3xf32, #tpu.memory_space<smem>>
    %13 = vector.extract_strided_slice %4 {offsets = [1, 0], sizes = [1, 128], strides = [1, 1]} : vector<3x128xf32> to vector<1x128xf32>
    %14 = vector.broadcast %12 : f32 to vector<1x128xf32>
    %15 = arith.mulf %14, %13 : vector<1x128xf32>
    %16 = arith.addf %11, %15 : vector<1x128xf32>
    %c0_9 = arith.constant 0 : index
    %c2 = arith.constant 2 : index
    %17 = memref.load %arg1[%c0_9, %c2] : memref<5x3xf32, #tpu.memory_space<smem>>
    %18 = vector.extract_strided_slice %4 {offsets = [2, 0], sizes = [1, 128], strides = [1, 1]} : vector<3x128xf32> to vector<1x128xf32>
    %19 = vector.broadcast %17 : f32 to vector<1x128xf32>
    %20 = arith.mulf %19, %18 : vector<1x128xf32>
    %21 = arith.addf %16, %20 : vector<1x128xf32>
    %c1_10 = arith.constant 1 : index
    %22 = memref.load %arg2[%c1_10] : memref<5xf32, #tpu.memory_space<smem>>
    %c1_11 = arith.constant 1 : index
    %c0_12 = arith.constant 0 : index
    %23 = memref.load %arg1[%c1_11, %c0_12] : memref<5x3xf32, #tpu.memory_space<smem>>
    %24 = vector.extract_strided_slice %4 {offsets = [0, 0], sizes = [1, 128], strides = [1, 1]} : vector<3x128xf32> to vector<1x128xf32>
    %25 = vector.broadcast %23 : f32 to vector<1x128xf32>
    %26 = arith.mulf %25, %24 : vector<1x128xf32>
    %27 = vector.broadcast %22 : f32 to vector<1x128xf32>
    %28 = arith.addf %27, %26 : vector<1x128xf32>
    %c1_13 = arith.constant 1 : index
    %c1_14 = arith.constant 1 : index
    %29 = memref.load %arg1[%c1_13, %c1_14] : memref<5x3xf32, #tpu.memory_space<smem>>
    %30 = vector.extract_strided_slice %4 {offsets = [1, 0], sizes = [1, 128], strides = [1, 1]} : vector<3x128xf32> to vector<1x128xf32>
    %31 = vector.broadcast %29 : f32 to vector<1x128xf32>
    %32 = arith.mulf %31, %30 : vector<1x128xf32>
    %33 = arith.addf %28, %32 : vector<1x128xf32>
    %c1_15 = arith.constant 1 : index
    %c2_16 = arith.constant 2 : index
    %34 = memref.load %arg1[%c1_15, %c2_16] : memref<5x3xf32, #tpu.memory_space<smem>>
    %35 = vector.extract_strided_slice %4 {offsets = [2, 0], sizes = [1, 128], strides = [1, 1]} : vector<3x128xf32> to vector<1x128xf32>
    %36 = vector.broadcast %34 : f32 to vector<1x128xf32>
    %37 = arith.mulf %36, %35 : vector<1x128xf32>
    %38 = arith.addf %33, %37 : vector<1x128xf32>
    %c2_17 = arith.constant 2 : index
    %39 = memref.load %arg2[%c2_17] : memref<5xf32, #tpu.memory_space<smem>>
    %c2_18 = arith.constant 2 : index
    %c0_19 = arith.constant 0 : index
    %40 = memref.load %arg1[%c2_18, %c0_19] : memref<5x3xf32, #tpu.memory_space<smem>>
    %41 = vector.extract_strided_slice %4 {offsets = [0, 0], sizes = [1, 128], strides = [1, 1]} : vector<3x128xf32> to vector<1x128xf32>
    %42 = vector.broadcast %40 : f32 to vector<1x128xf32>
    %43 = arith.mulf %42, %41 : vector<1x128xf32>
    %44 = vector.broadcast %39 : f32 to vector<1x128xf32>
    %45 = arith.addf %44, %43 : vector<1x128xf32>
    %c2_20 = arith.constant 2 : index
    %c1_21 = arith.constant 1 : index
    %46 = memref.load %arg1[%c2_20, %c1_21] : memref<5x3xf32, #tpu.memory_space<smem>>
    %47 = vector.extract_strided_slice %4 {offsets = [1, 0], sizes = [1, 128], strides = [1, 1]} : vector<3x128xf32> to vector<1x128xf32>
    %48 = vector.broadcast %46 : f32 to vector<1x128xf32>
    %49 = arith.mulf %48, %47 : vector<1x128xf32>
    %50 = arith.addf %45, %49 : vector<1x128xf32>
    %c2_22 = arith.constant 2 : index
    %c2_23 = arith.constant 2 : index
    %51 = memref.load %arg1[%c2_22, %c2_23] : memref<5x3xf32, #tpu.memory_space<smem>>
    %52 = vector.extract_strided_slice %4 {offsets = [2, 0], sizes = [1, 128], strides = [1, 1]} : vector<3x128xf32> to vector<1x128xf32>
    %53 = vector.broadcast %51 : f32 to vector<1x128xf32>
    %54 = arith.mulf %53, %52 : vector<1x128xf32>
    %55 = arith.addf %50, %54 : vector<1x128xf32>
    %c3 = arith.constant 3 : index
    %56 = memref.load %arg2[%c3] : memref<5xf32, #tpu.memory_space<smem>>
    %c3_24 = arith.constant 3 : index
    %c0_25 = arith.constant 0 : index
    %57 = memref.load %arg1[%c3_24, %c0_25] : memref<5x3xf32, #tpu.memory_space<smem>>
    %58 = vector.extract_strided_slice %4 {offsets = [0, 0], sizes = [1, 128], strides = [1, 1]} : vector<3x128xf32> to vector<1x128xf32>
    %59 = vector.broadcast %57 : f32 to vector<1x128xf32>
    %60 = arith.mulf %59, %58 : vector<1x128xf32>
    %61 = vector.broadcast %56 : f32 to vector<1x128xf32>
    %62 = arith.addf %61, %60 : vector<1x128xf32>
    %c3_26 = arith.constant 3 : index
    %c1_27 = arith.constant 1 : index
    %63 = memref.load %arg1[%c3_26, %c1_27] : memref<5x3xf32, #tpu.memory_space<smem>>
    %64 = vector.extract_strided_slice %4 {offsets = [1, 0], sizes = [1, 128], strides = [1, 1]} : vector<3x128xf32> to vector<1x128xf32>
    %65 = vector.broadcast %63 : f32 to vector<1x128xf32>
    %66 = arith.mulf %65, %64 : vector<1x128xf32>
    %67 = arith.addf %62, %66 : vector<1x128xf32>
    %c3_28 = arith.constant 3 : index
    %c2_29 = arith.constant 2 : index
    %68 = memref.load %arg1[%c3_28, %c2_29] : memref<5x3xf32, #tpu.memory_space<smem>>
    %69 = vector.extract_strided_slice %4 {offsets = [2, 0], sizes = [1, 128], strides = [1, 1]} : vector<3x128xf32> to vector<1x128xf32>
    %70 = vector.broadcast %68 : f32 to vector<1x128xf32>
    %71 = arith.mulf %70, %69 : vector<1x128xf32>
    %72 = arith.addf %67, %71 : vector<1x128xf32>
    %c4 = arith.constant 4 : index
    %73 = memref.load %arg2[%c4] : memref<5xf32, #tpu.memory_space<smem>>
    %c4_30 = arith.constant 4 : index
    %c0_31 = arith.constant 0 : index
    %74 = memref.load %arg1[%c4_30, %c0_31] : memref<5x3xf32, #tpu.memory_space<smem>>
    %75 = vector.extract_strided_slice %4 {offsets = [0, 0], sizes = [1, 128], strides = [1, 1]} : vector<3x128xf32> to vector<1x128xf32>
    %76 = vector.broadcast %74 : f32 to vector<1x128xf32>
    %77 = arith.mulf %76, %75 : vector<1x128xf32>
    %78 = vector.broadcast %73 : f32 to vector<1x128xf32>
    %79 = arith.addf %78, %77 : vector<1x128xf32>
    %c4_32 = arith.constant 4 : index
    %c1_33 = arith.constant 1 : index
    %80 = memref.load %arg1[%c4_32, %c1_33] : memref<5x3xf32, #tpu.memory_space<smem>>
    %81 = vector.extract_strided_slice %4 {offsets = [1, 0], sizes = [1, 128], strides = [1, 1]} : vector<3x128xf32> to vector<1x128xf32>
    %82 = vector.broadcast %80 : f32 to vector<1x128xf32>
    %83 = arith.mulf %82, %81 : vector<1x128xf32>
    %84 = arith.addf %79, %83 : vector<1x128xf32>
    %c4_34 = arith.constant 4 : index
    %c2_35 = arith.constant 2 : index
    %85 = memref.load %arg1[%c4_34, %c2_35] : memref<5x3xf32, #tpu.memory_space<smem>>
    %86 = vector.extract_strided_slice %4 {offsets = [2, 0], sizes = [1, 128], strides = [1, 1]} : vector<3x128xf32> to vector<1x128xf32>
    %87 = vector.broadcast %85 : f32 to vector<1x128xf32>
    %88 = arith.mulf %87, %86 : vector<1x128xf32>
    %89 = arith.addf %84, %88 : vector<1x128xf32>
    %cst = arith.constant 0.000000e+00 : f32
    %90 = vector.broadcast %cst : f32 to vector<3x128xf32>
    %91 = tpu.concatenate %21, %38, %55, %72, %89, %90 in 0 : vector<1x128xf32>, vector<1x128xf32>, vector<1x128xf32>, vector<1x128xf32>, vector<1x128xf32>, vector<3x128xf32> -> vector<8x128xf32>
    %c0_36 = arith.constant 0 : index
    %c0_37 = arith.constant 0 : index
    %92 = vector.load %arg4[%c0_36, %c0_37] : memref<8x128xf32, #tpu.memory_space<vmem>>, vector<8x128xf32>
    tpu.vector_store %arg4[%c0_36, %c0_37], %91 {strides = array<i32>} : memref<8x128xf32, #tpu.memory_space<vmem>>, vector<8x128xf32>,
    return
  }
  func.func @transform_0(%arg0: i32) -> (i32, i32) {
    %c0_i32 = arith.constant 0 : i32
    %c0_i32_0 = arith.constant 0 : i32
    %c0_i32_1 = arith.constant 0 : i32
    return %c0_i32, %c0_i32_0 : i32, i32
  }
  func.func @transform_1(%arg0: i32) -> i32 {
    %c0_i32 = arith.constant 0 : i32
    %c0_i32_0 = arith.constant 0 : i32
    return %c0_i32 : i32
  }
  func.func @transform_2(%arg0: i32) -> (i32, i32, i32) {
    %c0_i32 = arith.constant 0 : i32
    %c0_i32_0 = arith.constant 0 : i32
    %c0_i32_1 = arith.constant 0 : i32
    return %c0_i32, %c0_i32_0, %arg0 : i32, i32, i32
  }
  func.func @transform_3(%arg0: i32) -> (i32, i32) {
    %c0_i32 = arith.constant 0 : i32
    %c0_i32_0 = arith.constant 0 : i32
    return %c0_i32, %arg0 : i32, i32
  }
}

</mosaic_0001>

<bundles_post_ra>
// kernel: multiple_input_forward.1
= control target key start
LH: loop header
LB: loop body
LE: loop exit
PB: predicated region body
PF: predicated region fallthrough
CT: control target
= control target key end

     0   :  { %8 = vsyncpa [#allocation3], 0  ;;  %s318_s0 = inlined_call_operand.vmem [shape: f32[5,3], index: 0, kind: input, shape index: {}]   ;;  %s319_s1 = inlined_call_operand.vmem [shape: f32[5], index: 1, kind: input, shape index: {}]   ;;  %s320_s2 = inlined_call_operand.vmem [shape: f32[2,3,128], index: 2, kind: input, shape index: {}]   ;;  %s321_s3 = inlined_call_operand.vmem [shape: f32[8,128], index: 3, kind: output, shape index: {}]  }
   0x1   :  { %s16_s14 = sshll.u32 %s318_s0, 4  ;;  %s17_s14 = int_to_ptr.vmem [resolvable:$true] %s16_s14 }
   0x2   :  { %9 = vsyncpa [#allocation5], 0  ;;  %s26_s17 = sshll.u32 %s319_s1, 4  ;;  %s193_s18 = scalar_lea.vmem %s17_s14, 128  ;;  %s27_s17 = int_to_ptr.vmem [resolvable:$true] %s26_s17 }
   0x3   :  { %p194_p0 = scmp.ne.s32.totalorder %s17_s14, %s193_s18  ;;  %p198_p1 = scmp.lt.s32.totalorder %s17_s14, %s17_s14 }
   0x4   :  { %p199_p2 = scmp.lt.s32.totalorder %s193_s18, %s193_s18 }
   0x6   :  { %p200_p3 = por %p199_p2, %p198_p1 }
   0x8   :  { %p201_p4 = pnand %p200_p3, %p194_p0 }
   0xa   :  { %204 = shalt.err (!%p201_p4)
}
   0xb   :  { %s221_s19 = smov [#allocation2]   ;;  %s205_s20 = scalar_lea.vmem %s27_s17, 16 }
   0xc   :  { %19 = dma.vmem_to_smem %s17_s14, 128, %s221_s19, [#allocation3]  }
   0xd   :  { %p206_p5 = scmp.ne.s32.totalorder %s27_s17, %s205_s20  ;;  %p210_p6 = scmp.lt.s32.totalorder %s27_s17, %s27_s17 }
   0xe   :  { %p211_p7 = scmp.lt.s32.totalorder %s205_s20, %s205_s20 }
  0x10   :  { %p212_p8 = por %p211_p7, %p210_p6 }
  0x12   :  { %p213_p9 = pnand %p212_p8, %p206_p5 }
  0x14   :  { %216 = shalt.err (!%p213_p9)
}
  0x15   :  { %s222_s0 = smov [#allocation4]  }
  0x16   :  { %29 = dma.vmem_to_smem %s27_s17, 16, %s222_s0, [#allocation5]  }
  0x17   :  { %217 = dma.done.wait [#allocation3], 128  }
  0x18   :  { %218 = vsyncadd [#allocation3], 4294967168 }
  0x19   :  { %219 = dma.done.wait [#allocation5], 16  }
  0x1a   :  { %220 = vsyncadd [#allocation5], 4294967280 }
  0x1b   :  { %38 = sfence }
  0x1c   :  { %s43_s1 = sld [smem:[#allocation4]]  ;;  %s173_s22 = sld [smem:[#allocation2 + $0x1]]  ;;  %v39_v0 = vld [vmem:[%s320_s2] sm:$0x7]  ;;  %v172_v1 = vld [vmem:[%s320_s2 + $0x4] sm:$0x7] }
  0x1d   :  { %s44_s21 = sld [smem:[#allocation2]]  ;;  %s174_s25 = sld [smem:[#allocation2 + $0x2]]  ;;  %v265_v2 = vadd.f32 %v172_v1, %v39_v0  ;;  %vm155_vm0 = vcmask 1040384   ;;  %vm157_vm1 = vcmask 1041408   ;;  %vm159_vm2 = vcmask 1042432  }
  0x1e   :  { %s252_s26 = sld [smem:[#allocation4 + $0x1]]  ;;  %s176_s29 = sld [smem:[#allocation2 + $0x80]]  ;;  %vm161_vm3 = vcmask 1043456   ;;  %vm163_vm4 = vcmask 1044480  }
  0x1f   :  { %s177_s30 = sld [smem:[#allocation2 + $0x81]]  ;;  %s257_s4 = sld [smem:[#allocation2 + $0x82]] }
  0x20   :  { %s259_s5 = sld [smem:[#allocation4 + $0x2]]  ;;  %s261_s6 = sld [smem:[#allocation2 + $0x100]] }
  0x21   :  { %s263_s7 = sld [smem:[#allocation2 + $0x101]]  ;;  %s267_s8 = sld [smem:[#allocation2 + $0x102]] }
  0x22   :  { %v47_v4 = vstv %s43_s1  ;;  %v50_v5 = vstv %s173_s22  ;;  %s269_s9 = sld [smem:[#allocation4 + $0x3]]  ;;  %s271_s2 = sld [smem:[#allocation2 + $0x180]] }
  0x23   :  { %v45_v3 = vstv %s44_s21  ;;  %v51_v7 = vmul.f32 %v50_v5, %v265_v2  ;;  %v57_v8 = vstv %s174_s25  ;;  %s275_s10 = sld [smem:[#allocation2 + $0x181]]  ;;  %s277_s11 = sld [smem:[#allocation2 + $0x182]] }
  0x24   :  { %v46_v6 = vmul.f32 %v45_v3, %v265_v2  ;;  %v58_v9 = vmul.f32 %v57_v8, %v265_v2  ;;  %v65_v10 = vstv %s176_s29  ;;  %v67_v11 = vstv %s252_s26  ;;  %s281_s12 = sld [smem:[#allocation4 + $0x4]]  ;;  %s285_s13 = sld [smem:[#allocation2 + $0x200]] }
  0x25   :  { %v70_v12 = vstv %s177_s30  ;;  %v53_v14 = vrot.slane %v51_v7, 1  ;;  %v66_v15 = vmul.f32 %v65_v10, %v265_v2  ;;  %s287_s14 = sld [smem:[#allocation2 + $0x201]]  ;;  %v77_v18 = vstv %s257_s4  ;;  %s293_s15 = sld [smem:[#allocation2 + $0x202]] }
  0x26   :  { %v48_v13 = vadd.f32 %v47_v4, %v46_v6  ;;  %v71_v16 = vmul.f32 %v70_v12, %v265_v2  ;;  %v60_v17 = vrot.slane %v58_v9, 2  ;;  %v85_v19 = vstv %s261_s6 }
  0x27   :  { %v87_v20 = vstv %s259_s5  ;;  %v68_v22 = vadd.f32 %v67_v11, %v66_v15  ;;  %v78_v24 = vmul.f32 %v77_v18, %v265_v2  ;;  %v86_v25 = vmul.f32 %v85_v19, %v265_v2 }
  0x28   :  { %v55_v21 = vadd.f32 %v53_v14, %v48_v13  ;;  %v73_v23 = vrot.slane %v71_v16, 1  ;;  %v90_v26 = vstv %s263_s7  ;;  %v97_v27 = vstv %s267_s8 }
  0x29   :  { %v105_v28 = vstv %s271_s2  ;;  %v80_v31 = vrot.slane %v78_v24, 2  ;;  %v91_v32 = vmul.f32 %v90_v26, %v265_v2  ;;  %v88_v33 = vadd.f32 %v87_v20, %v86_v25 }
  0x2a   :  { %v62_v29 = vadd.f32 %v60_v17, %v55_v21  ;;  %v75_v30 = vadd.f32 %v73_v23, %v68_v22  ;;  %v98_v34 = vmul.f32 %v97_v27, %v265_v2  ;;  %v106_v35 = vmul.f32 %v105_v28, %v265_v2 }
  0x2b   :  { %v107_v36 = vstv %s269_s9  ;;  %v93_v38 = vrot.slane %v91_v32, 1  ;;  %v110_v39 = vstv %s275_s10  ;;  %v117_v40 = vstv %s277_s11 }
  0x2c   :  { %v82_v37 = vadd.f32 %v80_v31, %v75_v30  ;;  %v100_v41 = vrot.slane %v98_v34, 2  ;;  %v108_v42 = vadd.f32 %v107_v36, %v106_v35  ;;  %v111_v43 = vmul.f32 %v110_v39, %v265_v2 }
  0x2d   :  { %v118_v44 = vmul.f32 %v117_v40, %v265_v2  ;;  %v95_v45 = vadd.f32 %v93_v38, %v88_v33  ;;  %v125_v46 = vstv %s285_s13  ;;  %v127_v47 = vstv %s281_s12 }
  0x2e   :  { %v130_v48 = vstv %s287_s14  ;;  %v113_v49 = vrot.slane %v111_v43, 1  ;;  %v126_v51 = vmul.f32 %v125_v46, %v265_v2  ;;  %v137_v54 = vstv %s293_s15 }
  0x2f   :  { %v120_v50 = vrot.slane %v118_v44, 2  ;;  %v131_v52 = vmul.f32 %v130_v48, %v265_v2  ;;  %v102_v53 = vadd.f32 %v100_v41, %v95_v45  ;;  %v144_v55 = vrot.slane %v82_v37, 7 }
  0x30   :  { %v115_v56 = vadd.f32 %v113_v49, %v108_v42  ;;  %v128_v57 = vadd.f32 %v127_v47, %v126_v51  ;;  %v138_v59 = vmul.f32 %v137_v54, %v265_v2 }
  0x31   :  { %v133_v58 = vrot.slane %v131_v52, 1  ;;  %v147_v60 = vrot.slane %v102_v53, 6  ;;  %v156_v61 = vsel %vm155_vm0, %v62_v29, %v144_v55 }
  0x32   :  { %v122_v62 = vadd.f32 %v120_v50, %v115_v56  ;;  %v140_v0 = vrot.slane %v138_v59, 2 }
  0x33   :  { %v135_v63 = vadd.f32 %v133_v58, %v128_v57  ;;  %v158_v1 = vsel %vm157_vm1, %v156_v61, %v147_v60 }
  0x34   :  { %v150_v4 = vrot.slane %v122_v62, 5 }
  0x35   :  { %v142_v3 = vadd.f32 %v140_v0, %v135_v63 }
  0x36   :  { %v160_v6 = vsel %vm159_vm2, %v158_v1, %v150_v4 }
  0x37   :  { %v153_v5 = vrot.slane %v142_v3, 4 }
  0x39   :  { %v162_v7 = vsel %vm161_vm3, %v160_v6, %v153_v5 }
  0x3a   :  { %v164_v8 = vsel %vm163_vm4, %v162_v7, 0.0 }
  0x3b   :  { %165 = vst [vmem:[%s321_s3] sm:$0xff] %v164_v8 }
  0x3c   :  { %170 = vsyncpa [#allocation3], 1 }
  0x3d   :  { %171 = vsyncpa [#allocation5], 1 }

</bundles_post_ra>
